<compile_context>
chip_gen: v6e
topology: v6e:2x2x1
jax: 0.10.0
libtpu: 0.0.40
codegen_flags: <defaults>
</compile_context>

<pallas_src>
import functools

import jax
import jax.numpy as jnp
from jax.experimental import pallas as pl
from jax.experimental.pallas import tpu as pltpu


def _cdiv(a, b):
    return (a + b - 1) // b


def _round_up(x, m):
    return ((x + m - 1) // m) * m


def _default_compute_dtype():
    """bf16 on v6e/v7x (bf16 VPU/EUP), f32 on v5e and older / unknown."""
    try:
        kind = jax.devices()[0].device_kind.lower()
    except Exception:  # pragma: no cover - defensive
        return jnp.dtype(jnp.float32)
    if ("v6" in kind) or ("v7" in kind):
        return jnp.dtype(jnp.bfloat16)
    return jnp.dtype(jnp.float32)


def _fuse_params(f_params, fhat_params):
    """Fuse the f / f_hat MLPs into a single MLP that outputs f(x) - f_hat(x)."""
    L = len(f_params)
    assert len(fhat_params) == L and L >= 1
    fused = []
    if L == 1:
        (wf, bf), (wh, bh) = f_params[0], fhat_params[0]
        fused.append((wf - wh, bf - bh))
        return fused
    # First layer: features of both nets side by side.
    (wf, bf), (wh, bh) = f_params[0], fhat_params[0]
    fused.append((jnp.concatenate([wf, wh], axis=1),
                  jnp.concatenate([bf, bh], axis=0)))
    # Hidden layers: block-diagonal (the two halves evolve independently).
    for l in range(1, L - 1):
        (wf, bf), (wh, bh) = f_params[l], fhat_params[l]
        k, n = wf.shape
        kh, nh = wh.shape
        w = jnp.zeros((k + kh, n + nh), wf.dtype)
        w = w.at[:k, :n].set(wf).at[k:, n:].set(wh)
        fused.append((w, jnp.concatenate([bf, bh], axis=0)))
    # Last layer: emit (target - prediction) directly.
    (wf, bf), (wh, bh) = f_params[-1], fhat_params[-1]
    fused.append((jnp.concatenate([wf, -wh], axis=0), bf - bh))
    return fused


def _pack_slabs(fused, compute_dtype):
    """Pre-transpose + zero-pad fused (W, b) into (L,Nmax,Kmax) / (L,Nmax,1) slabs.

    Weights are stored in (out, in) orientation so the kernel's feature-major
    activations (features, bn) are multiplied as W^T @ h with no in-kernel
    transpose.
    """
    layer_dims = tuple((int(w.shape[0]), int(w.shape[1])) for w, _ in fused)  # (k_in, n_out)
    kmax = max(k for k, _ in layer_dims)
    nmax = max(n for _, n in layer_dims)
    L = len(fused)
    w_slab = jnp.zeros((L, nmax, kmax), compute_dtype)
    b_slab = jnp.zeros((L, nmax, 1), jnp.float32)
    for l, (w, b) in enumerate(fused):
        k, n = layer_dims[l]
        w_slab = w_slab.at[l, :n, :k].set(jnp.transpose(w).astype(compute_dtype))
        b_slab = b_slab.at[l, :n, 0].set(b.astype(jnp.float32))
    return w_slab, b_slab, layer_dims


def _rnd_kernel(layer_dims, compute_dtype, x_ref, w_ref, b_ref, o_ref):
    """One batch tile, feature-major: fused MLP -> per-column L2 norm (1, bn)."""
    num_layers = len(layer_dims)
    h = x_ref[...]                                 # (ob_dim, bn)
    if h.dtype != compute_dtype:
        h = h.astype(compute_dtype)
    for l, (k, n) in enumerate(layer_dims):        # static unroll over layers
        w = w_ref[l, :n, :k]                       # (n, k): slice the ref, not the value
        b = b_ref[l, :n, :]                        # (n, 1), f32
        # (n, k) @ (k, bn) on the MXU, f32 accumulate; bias broadcast over lanes.
        h = jnp.dot(w, h, preferred_element_type=jnp.float32) + b
        if l < num_layers - 1:
            if compute_dtype != jnp.float32:
                h = h.astype(compute_dtype)        # bf16 tanh path (v6e/v7x EUP)
            h = jnp.tanh(h)
    # h == (target - prediction): shape (out, bn), f32.  Sublane reduce -> (1, bn).
    nsq = jnp.sum(h * h, axis=0, keepdims=True)
    o_ref[...] = jnp.sqrt(nsq)


def rnd_forward(ob_no, f_params, fhat_params, *, batch_tile=8192,
                compute_dtype=jnp.float32):
    """Per-row RND error ||f(x) - f_hat(x)||_2 via one Pallas kernel.

    compute_dtype: jnp.float32 (exact; keep on v5e), jnp.bfloat16 (fast path on
    v6e/v7x), or None to auto-select from the device kind.
    """
    N, ob_dim = ob_no.shape
    if compute_dtype is None:
        compute_dtype = _default_compute_dtype()
    compute_dtype = jnp.dtype(compute_dtype)

    # Batch tile (multiple of 128 lanes).  Cap at ceil(N/2) rounded up so the
    # ("parallel",) grid has >= 2 steps whenever N allows it (v7x has 2 TCs).
    bt = _round_up(max(int(batch_tile), 128), 128)
    half = _round_up(_cdiv(N, 2), 128)
    bn = max(128, min(bt, half))
    num_tiles = _cdiv(N, bn)
    n_pad = num_tiles * bn

    fused = _fuse_params(f_params, fhat_params)
    w_slab, b_slab, layer_dims = _pack_slabs(fused, compute_dtype)
    nmax = w_slab.shape[1]

    # Batch-in-lanes layout: feed x^T of shape (ob_dim, N_pad) to the kernel.
    x_t = jnp.transpose(ob_no)
    if n_pad != N:
        x_t = jnp.pad(x_t, ((0, 0), (0, n_pad - N)))

    # VMEM budget derived from bn (input/output double buffers + generous
    # allowance for live f32 activation intermediates + resident slabs).
    w_itemsize = compute_dtype.itemsize
    vmem_bytes = (
        2 * ob_dim * bn * x_t.dtype.itemsize          # input double buffer
        + 2 * 8 * bn * 4                              # output double buffer (sublane-padded)
        + 12 * nmax * bn * 4                          # live activation intermediates
        + 4 * (w_slab.size * w_itemsize + b_slab.size * 4)  # slabs (lane padding + 2 bufs)
        + (4 << 20)                                   # headroom
    )
    vmem_bytes = int(min(max(vmem_bytes, 32 << 20), 96 << 20))

    kernel = functools.partial(_rnd_kernel, layer_dims, compute_dtype)
    out = pl.pallas_call(
        kernel,
        out_shape=jax.ShapeDtypeStruct((1, n_pad), jnp.float32),
        grid=(num_tiles,),
        in_specs=[
            pl.BlockSpec((ob_dim, bn), lambda i: (0, i)),          # batch on lanes
            pl.BlockSpec(w_slab.shape, lambda i: (0, 0, 0)),       # resident weights
            pl.BlockSpec(b_slab.shape, lambda i: (0, 0, 0)),       # resident biases
        ],
        out_specs=pl.BlockSpec((1, bn), lambda i: (0, i)),         # lane-dense row
        compiler_params=pltpu.CompilerParams(
            dimension_semantics=("parallel",),
            vmem_limit_bytes=vmem_bytes,
        ),
    )(x_t, w_slab, b_slab)
    return out[0, :N]


def build_mlp_params(key, ob_dim, output_size, n_layers, size, init):
    """Mirror ptu.build_mlp layer shapes; init mimics init_method_1/2."""
    dims = [ob_dim] + [size] * n_layers + [output_size]
    params = []
    for i in range(len(dims) - 1):
        key, kw, kb = jax.random.split(key, 3)
        if init == "uniform":
            w = jax.random.uniform(kw, (dims[i], dims[i + 1]), jnp.float32)
            b = jax.random.uniform(kb, (dims[i + 1],), jnp.float32)
        else:
            w = jax.random.normal(kw, (dims[i], dims[i + 1]), jnp.float32)
            b = jax.random.normal(kb, (dims[i + 1],), jnp.float32)
        params.append((w, b))
    return params


def reference_forward(ob_no, f_params, fhat_params):
    """Pure-JAX f32 reference (highest matmul precision)."""
    def mlp(h, params):
        for i, (w, b) in enumerate(params):
            h = jnp.dot(h, w, precision=jax.lax.Precision.HIGHEST) + b
            if i < len(params) - 1:
                h = jnp.tanh(h)
        return h
    diff = mlp(ob_no, f_params) - mlp(ob_no, fhat_params)
    return jnp.sqrt(jnp.sum(diff * diff, axis=1))


if __name__ == "__main__":
    # Hyperparameters implied by the module's __init__.
    ob_dim = 16
    rnd_output_size = 8
    rnd_n_layers = 2
    rnd_size = 32

    key = jax.random.PRNGKey(0)
    k_x, k_f, k_fhat, k_x2 = jax.random.split(key, 4)

    f_params = build_mlp_params(k_f, ob_dim, rnd_output_size,
                                rnd_n_layers, rnd_size, init="uniform")
    fhat_params = build_mlp_params(k_fhat, ob_dim, rnd_output_size,
                                   rnd_n_layers, rnd_size, init="normal")

    # 1) Strict f32 check, non-multiple batch: exercises padding + a 3-step
    #    "parallel" grid with a small tile.
    batch = 300
    ob_no = jax.random.normal(k_x, (batch, ob_dim), jnp.float32)
    err = rnd_forward(ob_no, f_params, fhat_params, batch_tile=128,
                      compute_dtype=jnp.float32)
    err = jax.block_until_ready(err)
    ref = reference_forward(ob_no, f_params, fhat_params)
    assert err.shape == (batch,)
    assert bool(jnp.allclose(err, ref, rtol=1e-4, atol=1e-4)), (
        "f32 mismatch: max abs diff %e" % float(jnp.max(jnp.abs(err - ref))))

    # 2) Auto compute dtype (bf16 fast path on v6e/v7x, f32 on v5e), default
    #    tile with the >=2-grid-step cap -> 2 steps that can split across
    #    v7x's two TensorCores.
    batch2 = 2048
    ob_no2 = jax.random.normal(k_x2, (batch2, ob_dim), jnp.float32)
    err2 = rnd_forward(ob_no2, f_params, fhat_params, compute_dtype=None)
    err2 = jax.block_until_ready(err2)
    ref2 = reference_forward(ob_no2, f_params, fhat_params)
    assert err2.shape == (batch2,)
    assert bool(jnp.all(jnp.isfinite(err2)))
    # Loose sanity check only -- bf16 activations are intentionally lower precision.
    assert bool(jnp.allclose(err2, ref2, rtol=1e-1, atol=5e-1))

    print("KERNEL_OK")
</pallas_src>

<mosaic_0001>
module attributes {stable_mosaic.version = 11 : i64} {
  func.func @_rnd_kernel(%arg0: i32, %arg1: memref<16x128xf32, #tpu.memory_space<vmem>>, %arg2: memref<3x64x64xf32, #tpu.memory_space<vmem>>, %arg3: memref<3x64x1xf32, #tpu.memory_space<vmem>>, %arg4: memref<1x128xf32, #tpu.memory_space<vmem>>) attributes {dimension_semantics = [#tpu.dimension_semantics<parallel>], iteration_bounds = array<i64: 3>, scalar_prefetch = 0 : i64, scratch_operands = 0 : i64, tpu.core_type = #tpu.core_type<tc>, window_params = [{transform_indices = @transform_0, window_bounds = array<i64: 16, 128>}, {pipeline_mode = #tpu.pipeline_mode<synchronous>, transform_indices = @transform_1, window_bounds = array<i64: 3, 64, 64>}, {pipeline_mode = #tpu.pipeline_mode<synchronous>, transform_indices = @transform_2, window_bounds = array<i64: 3, 64, 1>}, {transform_indices = @transform_3, window_bounds = array<i64: 1, 128>}]} {
    %c0 = arith.constant 0 : index
    %c0_0 = arith.constant 0 : index
    %0 = vector.load %arg1[%c0, %c0_0] : memref<16x128xf32, #tpu.memory_space<vmem>>, vector<16x128xf32>
    %c0_1 = arith.constant 0 : index
    %c0_2 = arith.constant 0 : index
    %c0_3 = arith.constant 0 : index
    %1 = vector.load %arg2[%c0_1, %c0_2, %c0_3] : memref<3x64x64xf32, #tpu.memory_space<vmem>>, vector<1x64x16xf32>
    %2 = vector.shape_cast %1 : vector<1x64x16xf32> to vector<64x16xf32>
    %c0_4 = arith.constant 0 : index
    %c0_5 = arith.constant 0 : index
    %c0_6 = arith.constant 0 : index
    %3 = vector.load %arg3[%c0_4, %c0_5, %c0_6] : memref<3x64x1xf32, #tpu.memory_space<vmem>>, vector<1x64x1xf32>
    %4 = vector.shape_cast %3 : vector<1x64x1xf32> to vector<64x1xf32>
    %cst = arith.constant dense<0.000000e+00> : vector<64x128xf32>
    %5 = tpu.matmul %2, %0, %cst {dimension_numbers = #tpu.dot_dimension_numbers<[1], [0], [0], [1], [0, 0, 1, 1], [], []>} : vector<64x16xf32>, vector<16x128xf32>, vector<64x128xf32> -> vector<64x128xf32>
    %6 = vector.broadcast %4 : vector<64x1xf32> to vector<64x128xf32>
    %7 = arith.addf %5, %6 : vector<64x128xf32>
    %8 = math.tanh %7 : vector<64x128xf32>
    %c1 = arith.constant 1 : index
    %c0_7 = arith.constant 0 : index
    %c0_8 = arith.constant 0 : index
    %9 = vector.load %arg2[%c1, %c0_7, %c0_8] : memref<3x64x64xf32, #tpu.memory_space<vmem>>, vector<1x64x64xf32>
    %10 = vector.shape_cast %9 : vector<1x64x64xf32> to vector<64x64xf32>
    %c1_9 = arith.constant 1 : index
    %c0_10 = arith.constant 0 : index
    %c0_11 = arith.constant 0 : index
    %11 = vector.load %arg3[%c1_9, %c0_10, %c0_11] : memref<3x64x1xf32, #tpu.memory_space<vmem>>, vector<1x64x1xf32>
    %12 = vector.shape_cast %11 : vector<1x64x1xf32> to vector<64x1xf32>
    %cst_12 = arith.constant dense<0.000000e+00> : vector<64x128xf32>
    %13 = tpu.matmul %10, %8, %cst_12 {dimension_numbers = #tpu.dot_dimension_numbers<[1], [0], [0], [1], [0, 0, 1, 1], [], []>} : vector<64x64xf32>, vector<64x128xf32>, vector<64x128xf32> -> vector<64x128xf32>
    %14 = vector.broadcast %12 : vector<64x1xf32> to vector<64x128xf32>
    %15 = arith.addf %13, %14 : vector<64x128xf32>
    %16 = math.tanh %15 : vector<64x128xf32>
    %c2 = arith.constant 2 : index
    %c0_13 = arith.constant 0 : index
    %c0_14 = arith.constant 0 : index
    %17 = vector.load %arg2[%c2, %c0_13, %c0_14] : memref<3x64x64xf32, #tpu.memory_space<vmem>>, vector<1x8x64xf32>
    %18 = vector.shape_cast %17 : vector<1x8x64xf32> to vector<8x64xf32>
    %c2_15 = arith.constant 2 : index
    %c0_16 = arith.constant 0 : index
    %c0_17 = arith.constant 0 : index
    %19 = vector.load %arg3[%c2_15, %c0_16, %c0_17] : memref<3x64x1xf32, #tpu.memory_space<vmem>>, vector<1x8x1xf32>
    %20 = vector.shape_cast %19 : vector<1x8x1xf32> to vector<8x1xf32>
    %cst_18 = arith.constant dense<0.000000e+00> : vector<8x128xf32>
    %21 = tpu.matmul %18, %16, %cst_18 {dimension_numbers = #tpu.dot_dimension_numbers<[1], [0], [0], [1], [0, 0, 1, 1], [], []>} : vector<8x64xf32>, vector<64x128xf32>, vector<8x128xf32> -> vector<8x128xf32>
    %22 = vector.broadcast %20 : vector<8x1xf32> to vector<8x128xf32>
    %23 = arith.addf %21, %22 : vector<8x128xf32>
    %24 = arith.mulf %23, %23 : vector<8x128xf32>
    %cst_19 = arith.constant dense<0.000000e+00> : vector<128xf32>
    %25 = vector.multi_reduction <add>, %24, %cst_19 [0] : vector<8x128xf32> to vector<128xf32>
    %26 = vector.shape_cast %25 : vector<128xf32> to vector<1x128xf32>
    %27 = math.sqrt %26 : vector<1x128xf32>
    %c0_20 = arith.constant 0 : index
    %c0_21 = arith.constant 0 : index
    %28 = vector.load %arg4[%c0_20, %c0_21] : memref<1x128xf32, #tpu.memory_space<vmem>>, vector<1x128xf32>
    tpu.vector_store %arg4[%c0_20, %c0_21], %27 {strides = array<i32>} : memref<1x128xf32, #tpu.memory_space<vmem>>, vector<1x128xf32>,
    return
  }
  func.func @transform_0(%arg0: i32) -> (i32, i32) {
    %c0_i32 = arith.constant 0 : i32
    %c0_i32_0 = arith.constant 0 : i32
    return %c0_i32, %arg0 : i32, i32
  }
  func.func @transform_1(%arg0: i32) -> (i32, i32, i32) {
    %c0_i32 = arith.constant 0 : i32
    %c0_i32_0 = arith.constant 0 : i32
    %c0_i32_1 = arith.constant 0 : i32
    %c0_i32_2 = arith.constant 0 : i32
    return %c0_i32, %c0_i32_0, %c0_i32_1 : i32, i32, i32
  }
  func.func @transform_2(%arg0: i32) -> (i32, i32, i32) {
    %c0_i32 = arith.constant 0 : i32
    %c0_i32_0 = arith.constant 0 : i32
    %c0_i32_1 = arith.constant 0 : i32
    %c0_i32_2 = arith.constant 0 : i32
    return %c0_i32, %c0_i32_0, %c0_i32_1 : i32, i32, i32
  }
  func.func @transform_3(%arg0: i32) -> (i32, i32) {
    %c0_i32 = arith.constant 0 : i32
    %c0_i32_0 = arith.constant 0 : i32
    return %c0_i32, %arg0 : i32, i32
  }
}

</mosaic_0001>

<bundles_post_ra>
// kernel: tpu_custom_call.1
= control target key start
LH: loop header
LB: loop body
LE: loop exit
PB: predicated region body
PF: predicated region fallthrough
CT: control target
= control target key end

     0   :  { %8 = vsyncpa [#allocation3], 0  ;;  %s1374_s0 = inlined_call_operand.hbm [shape: f32[16,384], index: 0, kind: input, shape index: {}]   ;;  %s1375_s1 = inlined_call_operand.vmem [shape: f32[3,64,64], index: 1, kind: input, shape index: {}]   ;;  %s1376_s2 = inlined_call_operand.vmem [shape: f32[3,64,1], index: 2, kind: input, shape index: {}]   ;;  %s1377_s3 = inlined_call_operand.hbm [shape: f32[1,384], index: 3, kind: output, shape index: {}]  }
   0x1   :  { %10 = vsyncpa [#allocation3 + $0x1], 0 }
   0x2   :  { %11 = vsyncpa [#allocation4], 0 }
   0x3   :  { %13 = vsyncpa [#allocation4 + $0x1], 0  ;;  %s1108_s12 = smov 0   ;;  %s1110_s13 = smov 0  }
   0x4   :  { %s1112_s14 = smov 0   ;;  %s1114_s15 = smov 0  }
   0x5 LB: > { %s1129_s16 = sadd.s32 4294967295, %s1078_s15   ;;  %s755_s17 = sadd.s32 4294967294, %s1078_s15   ;;  %s1078_s15 = sphi %s1114_s15, %s1392_s15   ;;  %s1074_s14 = sphi %s1112_s14, %s1391_s14   ;;  %s1070_s13 = sphi %s1110_s13, %s1390_s13   ;;  %s1066_s12 = sphi %s1108_s12, %s1389_s12  }
   0x6   : > { %s1133_s18 = sadd.s32 1, %s1078_s15   ;;  %s26_s19 = sadd.s32 1, %s1074_s14 }
   0x7   : > { %s23_s20 = ssub.s32 %s1078_s15, %s1133_s18  ;;  %p33_p0 = scmp.ne.s32.totalorder %s1074_s14, %s1070_s13 }
   0x8   : > { %p24_p1 = scmp.eq.s32.totalorder %s23_s20, 0  ;;  %p34_p2 = scmp.eq.s32.totalorder %s1078_s15, 0 }
   0x9   : > { %p39_p3 = scmp.ne.s32.totalorder %s1070_s13, %s1066_s12  ;;  %p40_p4 = scmp.eq.s32.totalorder %s1129_s16, 0 }
   0xa   : > { %s1145_s21 = scalar_select %p24_p1, %s1074_s14, %s26_s19  }
   0xb   : > { %p1147_p5 = por %p34_p2, %p33_p0  ;;  %p1151_p6 = por %p40_p4, %p39_p3 }
   0xc   : > { %p105_p7 = scmp.eq.s32.totalorder %s1129_s16, 2  ;;  %p111_p8 = scmp.eq.s32.totalorder %s755_s17, 2 }
   0xd   : > { %s1381_s23 = scalar_select %p1151_p6, 1, 0 }
   0xe   : > { %p910_p9 = scmp.lt.s32.totalorder %s1078_s15, 3  ;;  %p1157_p10 = por %p105_p7, %p33_p0 }
   0xf   : > { %p1161_p11 = por %p111_p8, %p39_p3  ;;  %s137_s26 = sand.u32 1, %s1074_s14  }
  0x10   : > { %s1382_s24 = scalar_select %p1157_p10, 1, 0 }
  0x11   : > { %s1383_s25 = scalar_select %p1161_p11, 1, 0 }
  0x12   : > { %s759_s27 = sshll.u32 %s1078_s15, 7  ;;  %s758_s28 = sshll.u32 %s137_s26, 4 }
  0x13   : > { %s1170_s4 = scalar_lea.hbm %s1374_s0, %s759_s27  ;;  %s141_s5 = scalar_lea.vmem [#allocation2], %s758_s28 }
  0x14   : > { %s147_s6 = sshll.u32 %s141_s5, 4  ;;  %p1174_p12 = pnand %p910_p9, %p1147_p5  ;;  %s1178_s6 = int_to_ptr.vmem [resolvable:$true] %s147_s6 }
  0x15   : > { %s1181_s8 = scalar_lea.sflag [#allocation3], %s137_s26  ;;  %s986_s9 = scalar_lea.hbm %s1170_s4, 256 }
  0x16   : > { %p987_p0 = scmp.ne.s32.totalorder %s1170_s4, %s986_s9  ;;  %p988_p1 = pneg %p1174_p12 }
  0x17   : > { %s991_s17 = scalar_lea.hbm %s1374_s0, 768  ;;  %p992_p4 = scmp.lt.s32.totalorder %s1170_s4, %s1374_s0 }
  0x18   : > { %p989_p2 = pnand %p988_p1, %p987_p0  ;;  %p993_p5 = scmp.lt.s32.totalorder %s991_s17, %s986_s9 }
  0x1a   : > { %p990_p3 = pneg %p989_p2  ;;  %p994_p7 = por %p993_p5, %p992_p4 }
  0x1c   : > { %p995_p8 = pnand %p994_p7, %p990_p3 }
  0x1e   : > { %998 = shalt.err (!%p995_p8)
}
  0x1f   : > { %s999_s22 = scalar_lea.vmem %s1178_s6, 256  ;;  %s1080_s26 = smov [#allocation2]  }
  0x20   : > { %p1000_p9 = scmp.ne.s32.totalorder %s1178_s6, %s999_s22  ;;  %s1004_s27 = sshll.u32 %s1080_s26, 4  ;;  %s1005_s27 = int_to_ptr.vmem [resolvable:$false] %s1004_s27 }
  0x21   : > { %s1006_s28 = scalar_lea.vmem %s1005_s27, 512  ;;  %p1007_p2 = scmp.lt.s32.totalorder %s1178_s6, %s1005_s27 }
  0x22   : > { %p1002_p13 = pnand %p1000_p9, %p988_p1  ;;  %p1008_p11 = scmp.lt.s32.totalorder %s1006_s28, %s999_s22 }
  0x24   : > { %p1003_p0 = pneg %p1002_p13  ;;  %p1009_p10 = por %p1008_p11, %p1007_p2 }
  0x26   : > { %p1010_p6 = pnand %p1009_p10, %p1003_p0 }
  0x28   : > { %1013 = shalt.err (!%p1010_p6)
}
  0x29   : > { %s1081_s29 = smov 384   ;;  %s1082_s30 = smov 128  }
  0x2a   : > { %s1083_s5 = smov 8   ;;  %p155_p13 = scmp.lt.s32.totalorder %s1078_s15, 4 }
  0x2b   : > { %905 = dma.hbm_to_vmem [thread:$0]  (!%p1174_p12), %s1170_s4, 256, %s1178_s6, %s1181_s8, %s1081_s29, %s1082_s30, %s1083_s5  }
  0x2c   : > { %p1385_p1 = scmp.ge.s32.totalorder %s1078_s15, 1 }
  0x2e   : > { %p156_p3 = pnand %p1385_p1, %p155_p13 }
  0x2f   : > { %s1206_s9 = sand.u32 (!%p156_p3), 1, %s1070_s13   ;;  %p1386_p6 = scmp.ne.s32.totalorder (!%p156_p3), %s1381_s23, 0 }
  0x30   : > { %159 = sbr.rel (%p156_p3) target bundleno = 773 (0x305), region = 32  ;;  %s761_s10 = sshll.u32 (!%p156_p3), %s1206_s9, 4 }
  0x31   : > { %s162_s11 = scalar_lea.sflag (!%p156_p3), [#allocation3], %s1206_s9  ;;  %s165_s17 = scalar_lea.vmem (!%p156_p3), [#allocation2], %s761_s10 }
  0x35   : > { %1057 = dma.done.wait (%p1386_p6), %s162_s11, 256  }
  0x36   : > { %1059 = vsyncadd (%p1386_p6), %s162_s11, 4294967040  ;;  %v1084_v0 = vmov 0   ;;  %vm245_vm0 = vcmask 130048   ;;  %v188_v1 = vld [vmem:[%s165_s17 + $0x8] sm:$0xff]  ;;  %v187_v2 = vld [vmem:[%s165_s17] sm:$0xff]  ;;  %vm441_vm1 = vcmask 523264  }
  0x37   : > { %950 = vset.pattern.permute.xlu0 %v1084_v0  ;;  %951 = vset.pattern.permute.xlu1 %v1084_v0  ;;  %v189_v3 = vld [vmem:[%s1375_s1] sm:$0xff]  ;;  %v190_v4 = vld [vmem:[%s1375_s1 + $0x8] sm:$0xff]  ;;  %v191_v5 = vld [vmem:[%s1375_s1 + $0x10] sm:$0xff]  ;;  %vm1086_vm2 = vmmov 0   ;;  %s797_s4 = sshll.u32 %s1129_s16, 4  ;;  %s186_s6 = scalar_lea.vmem [#allocation5], %s1206_s9 }
  0x38   : > { %835 = vmatprep.subr.mxu0 %v188_v1  ;;  %839 = vmatprep.mubr.msk.f32.mxu0 %vm245_vm0, %v189_v3  ;;  %v204_v6 = vld [vmem:[%s1376_s2 + $0x38] sm:$0xff]  ;;  %v202_v7 = vld [vmem:[%s1376_s2 + $0x28] sm:$0xff]  ;;  %v203_v8 = vld [vmem:[%s1376_s2 + $0x30] sm:$0xff]  ;;  %s689_s7 = sshll.u32 %s186_s6, 4  ;;  %s1338_s19 = scalar_lea.hbm %s1377_s3, %s797_s4  ;;  %s690_s7 = int_to_ptr.vmem [resolvable:$true] %s689_s7 }
  0x39   : > { %836 = vmatpush3.msra.mxu0 %v188_v1  ;;  %242 = vperm.xlu0 %950, %v204_v6   ;;  %v192_v9 = vld [vmem:[%s1375_s1 + $0x18] sm:$0xff]  ;;  %v201_v10 = vld [vmem:[%s1376_s2 + $0x20] sm:$0xff]  ;;  %v194_v13 = vld [vmem:[%s1375_s1 + $0x28] sm:$0xff]  ;;  %s677_s20 = scalar_lea.sflag [#allocation4], %s1206_s9  ;;  %s1014_s22 = scalar_lea.vmem %s690_s7, 16 }
  0x3a   : > { %837 = vmatprep.subr.mxu0 %v187_v2  ;;  %232 = vperm.xlu1 %951, %v202_v7   ;;  %v193_v11 = vld [vmem:[%s1375_s1 + $0x20] sm:$0xff]  ;;  %v200_v12 = vld [vmem:[%s1376_s2 + $0x18] sm:$0xff]  ;;  %v199_v14 = vld [vmem:[%s1376_s2 + $0x10] sm:$0xff]  ;;  %p1015_p10 = scmp.ne.s32.totalorder %s690_s7, %s1014_s22  ;;  %p1387_p11 = scmp.ne.s32.totalorder %s1382_s24, 0 }
  0x3b   : > { %838 = vmatpush3.msra.mxu0 %v187_v2  ;;  %v195_v15 = vld [vmem:[%s1375_s1 + $0x30] sm:$0xff]  ;;  %v198_v16 = vld [vmem:[%s1376_s2 + $0x8] sm:$0xff]  ;;  %v196_v17 = vld [vmem:[%s1375_s1 + $0x38] sm:$0xff]  ;;  %s1087_s16 = smov [#allocation5]  }
  0x3c   : > { %840 = vmatmul.mubr.msk.f32.vlgmr.msra.gmra.mxu0 %vm245_vm0, %v190_v4  ;;  %v197_v18 = vld [vmem:[%s1376_s2] sm:$0xff]  ;;  %v785_v19 = vld [vmem:[%s1376_s2 + $0x78] sm:$0xff]  ;;  %v784_v20 = vld [vmem:[%s1376_s2 + $0x70] sm:$0xff]  ;;  %v1085_v4 = vmov 0.0   ;;  %p1016_p12 = pnand %p1015_p10, %p1387_p11  ;;  %s1018_s26 = sshll.u32 %s1087_s16, 4  ;;  %s1019_s26 = int_to_ptr.vmem [resolvable:$false] %s1018_s26 }
  0x3d   : > { %842 = vmatprep.mubr.msk.f32.mxu0 %vm245_vm0, %v191_v5  ;;  %237 = vperm.xlu0 %950, %v203_v8   ;;  %v783_v21 = vld [vmem:[%s1376_s2 + $0x68] sm:$0xff]  ;;  %v782_v22 = vld [vmem:[%s1376_s2 + $0x60] sm:$0xff]  ;;  %v781_v23 = vld [vmem:[%s1376_s2 + $0x58] sm:$0xff]  ;;  %s1020_s27 = scalar_lea.vmem %s1019_s26, 32  ;;  %p1021_p5 = scmp.lt.s32.totalorder %s690_s7, %s1019_s26 }
  0x3e   : > { %227 = vperm.xlu1 %951, %v201_v10   ;;  %v780_v24 = vld [vmem:[%s1376_s2 + $0x50] sm:$0xff]  ;;  %v779_v25 = vld [vmem:[%s1376_s2 + $0x48] sm:$0xff]  ;;  %v778_v26 = vld [vmem:[%s1376_s2 + $0x40] sm:$0xff]  ;;  %879 = vmatprep.subr.mxu0 %v1085_v4  ;;  %p1017_p4 = pneg %p1016_p12  ;;  %p1022_p7 = scmp.lt.s32.totalorder %s1020_s27, %s1014_s22 }
  0x3f   : > { %v795_v27 = vld [vmem:[%s1376_s2 + $0x80] sm:$0xff]  ;;  %v771_v61 = vld [vmem:[%s1375_s1 + $0x48] sm:$0xff]  ;;  %v772_v62 = vld [vmem:[%s1375_s1 + $0x50] sm:$0xff] }
  0x40   : > { %843 = vmatmul.mubr.msk.f32.gmra.mxu0 %vm245_vm0, %v192_v9  ;;  %v770_v28 = vld [vmem:[%s1375_s1 + $0x40] sm:$0xff]  ;;  %v773_v63 = vld [vmem:[%s1375_s1 + $0x58] sm:$0xff]  ;;  %v775_v1 = vld [vmem:[%s1375_s1 + $0x68] sm:$0xff]  ;;  %p1023_p8 = por %p1022_p7, %p1021_p5 }
  0x41   : > { %845 = vmatprep.mubr.msk.f32.mxu0 %vm245_vm0, %v193_v11  ;;  %222 = vperm.xlu0 %950, %v200_v12   ;;  %v774_v0 = vld [vmem:[%s1375_s1 + $0x60] sm:$0xff]  ;;  %v776_v2 = vld [vmem:[%s1375_s1 + $0x70] sm:$0xff]  ;;  %v777_v3 = vld [vmem:[%s1375_s1 + $0x78] sm:$0xff] }
  0x42   : > { %217 = vperm.xlu1 %951, %v199_v14   ;;  %867 = vmatprep.mubr.msk.f32.mxu1 %vm441_vm1, %v770_v28  ;;  %p1024_p9 = pnand %p1023_p8, %p1017_p4 }
  0x44   : > { %846 = vmatmul.mubr.msk.f32.gmra.mxu0 %vm245_vm0, %v194_v13 }
  0x45   : > { %848 = vmatprep.mubr.msk.f32.mxu0 %vm245_vm0, %v195_v15  ;;  %212 = vperm.xlu0 %950, %v198_v16  }
  0x46   : > { %207 = vperm.xlu1 %951, %v197_v18  }
  0x48   : > { %849 = vmatmul.mubr.msk.f32.gmra.mxu0 %vm245_vm0, %v196_v17 }
  0x49   : > { %438 = vperm.xlu0 %950, %v785_v19   ;;  %895 = vmatprep.mubr.msk.f32.mxu0 %vm1086_vm2, %v1085_v4 }
  0x4a   : > { %433 = vperm.xlu1 %951, %v784_v20  }
  0x4d   : > { %428 = vperm.xlu0 %950, %v783_v21  }
  0x4e   : > { %423 = vperm.xlu1 %951, %v782_v22  }
  0x51   : > { %418 = vperm.xlu0 %950, %v781_v23  }
  0x52   : > { %413 = vperm.xlu1 %951, %v780_v24  }
  0x55   : > { %408 = vperm.xlu0 %950, %v779_v25  }
  0x56   : > { %403 = vperm.xlu1 %951, %v778_v26  }
  0x59   : > { %585 = vperm.xlu0 %950, %v795_v27  }
  0xb4   : > { %v243_v31 = vpop.permute.xlu0 %242 }
  0xb5   : > { %v233_v33 = vpop.permute.xlu1 %232 }
  0xb8   : > { %v238_v36 = vpop.permute.xlu0 %237 }
  0xb9   : > { %v228_v38 = vpop.permute.xlu1 %227 }
  0xbc   : > { %v223_v44 = vpop.permute.xlu0 %222 }
  0xbd   : > { %v218_v46 = vpop.permute.xlu1 %217 }
  0xc0   : > { %v213_v49 = vpop.permute.xlu0 %212 }
  0xc1   : > { %v208_v51 = vpop.permute.xlu1 %207 }
  0xc4   : > { %v439_v7 = vpop.permute.xlu0 %438 }
  0xc5   : > { %v434_v9 = vpop.permute.xlu1 %433 }
  0xc8   : > { %v429_v12 = vpop.permute.xlu0 %428 }
  0xc9   : > { %v424_v14 = vpop.permute.xlu1 %423 }
  0xcc   : > { %v419_v20 = vpop.permute.xlu0 %418 }
  0xcd   : > { %v414_v22 = vpop.permute.xlu1 %413 }
  0xd0   : > { %v409_v25 = vpop.permute.xlu0 %408 }
  0xd1   : > { %v404_v27 = vpop.permute.xlu1 %403 }
  0xfc   : > { %v841_v29 = vpop.f32.mrf.mxu0 }
  0xfd   : > { %v342_v50 = vadd.f32 %v841_v29, %v213_v49 }
  0xfe   : > { %v336_v30 = vpop.f32.mrf.mxu0 }
  0xff   : > { %v337_v52 = vadd.f32 %v336_v30, %v208_v51 }
 0x100   : > { %v844_v32 = vpop.f32.mrf.mxu0 }
 0x101   : > { %v352_v47 = vadd.f32 %v844_v32, %v223_v44 }
 0x102   : > { %v346_v34 = vpop.f32.mrf.mxu0 }
 0x103   : > { %v347_v48 = vadd.f32 %v346_v34, %v218_v46 }
 0x104   : > { %v847_v35 = vpop.f32.mrf.mxu0 }
 0x105   : > { %v362_v42 = vadd.f32 %v847_v35, %v233_v33 }
 0x106   : > { %v356_v37 = vpop.f32.mrf.mxu0 }
 0x107   : > { %v357_v45 = vadd.f32 %v356_v37, %v228_v38  ;;  %v586_v38 = vpop.permute.xlu0 %585 }
 0x108   : > { %v850_v39 = vpop.f32.mrf.mxu0 }
 0x109   : > { %v372_v40 = vadd.f32 %v850_v39, %v243_v31 }
 0x10a   : > { %v366_v41 = vpop.f32.mrf.mxu0 }
 0x10b   : > { %952 = vtanh.f32 %v372_v40  ;;  %v367_v43 = vadd.f32 %v366_v41, %v238_v36  ;;  %v794_v36 = vld [vmem:[%s1375_s1 + $0x80] sm:$0xff] }
 0x10d   : > { %954 = vtanh.f32 %v367_v43 }
 0x10e   : > { %956 = vtanh.f32 %v362_v42 }
 0x10f   : > { %958 = vtanh.f32 %v357_v45 }
 0x110   : > { %960 = vtanh.f32 %v352_v47 }
 0x111   : > { %962 = vtanh.f32 %v347_v48 }
 0x112   : > { %964 = vtanh.f32 %v342_v50 }
 0x113   : > { %966 = vtanh.f32 %v337_v52 }
 0x118   : > { %v953_v53 = vpop.eup %952 }
 0x119   : > { %851 = vmatprep.subr.mxu1 %v953_v53 }
 0x11a   : > { %v955_v54 = vpop.eup %954  ;;  %852 = vmatpush3.msra.mxu1 %v953_v53 }
 0x11b   : > { %853 = vmatprep.subr.mxu1 %v955_v54  ;;  %v957_v55 = vpop.eup %956 }
 0x11c   : > { %854 = vmatpush3.msra.mxu1 %v955_v54  ;;  %v959_v56 = vpop.eup %958 }
 0x11d   : > { %855 = vmatprep.subr.mxu1 %v957_v55  ;;  %v961_v57 = vpop.eup %960 }
 0x11e   : > { %856 = vmatpush3.msra.mxu1 %v957_v55  ;;  %v963_v58 = vpop.eup %962 }
 0x11f   : > { %857 = vmatprep.subr.mxu1 %v959_v56  ;;  %v965_v59 = vpop.eup %964 }
 0x120   : > { %858 = vmatpush3.msra.mxu1 %v959_v56  ;;  %v967_v60 = vpop.eup %966 }
 0x121   : > { %859 = vmatprep.subr.mxu1 %v961_v57 }
 0x122   : > { %860 = vmatpush3.msra.mxu1 %v961_v57 }
 0x123   : > { %861 = vmatprep.subr.mxu1 %v963_v58 }
 0x124   : > { %862 = vmatpush3.msra.mxu1 %v963_v58 }
 0x125   : > { %863 = vmatprep.subr.mxu1 %v965_v59 }
 0x126   : > { %864 = vmatpush3.msra.mxu1 %v965_v59 }
 0x127   : > { %865 = vmatprep.subr.mxu1 %v967_v60 }
 0x128   : > { %866 = vmatpush3.msra.mxu1 %v967_v60 }
 0x129   : > { %868 = vmatmul.mubr.msk.f32.vlgmr.msra.gmra.mxu1 %vm441_vm1, %v771_v61 }
 0x12a   : > { %870 = vmatprep.mubr.msk.f32.mxu1 %vm441_vm1, %v772_v62 }
 0x12d   : > { %871 = vmatmul.mubr.msk.f32.gmra.mxu1 %vm441_vm1, %v773_v63 }
 0x12e   : > { %873 = vmatprep.mubr.msk.f32.mxu1 %vm441_vm1, %v774_v0 }
 0x131   : > { %874 = vmatmul.mubr.msk.f32.gmra.mxu1 %vm441_vm1, %v775_v1 }
 0x132   : > { %876 = vmatprep.mubr.msk.f32.mxu1 %vm441_vm1, %v776_v2 }
 0x135   : > { %877 = vmatmul.mubr.msk.f32.gmra.mxu1 %vm441_vm1, %v777_v3 }
 0x1e9   : > { %v869_v5 = vpop.f32.mrf.mxu1 }
 0x1ea   : > { %v538_v26 = vadd.f32 %v869_v5, %v409_v25 }
 0x1eb   : > { %v532_v6 = vpop.f32.mrf.mxu1 }
 0x1ec   : > { %v533_v28 = vadd.f32 %v532_v6, %v404_v27 }
 0x1ed   : > { %v872_v8 = vpop.f32.mrf.mxu1 }
 0x1ee   : > { %v548_v23 = vadd.f32 %v872_v8, %v419_v20 }
 0x1ef   : > { %v542_v10 = vpop.f32.mrf.mxu1 }
 0x1f0   : > { %v543_v24 = vadd.f32 %v542_v10, %v414_v22 }
 0x1f1   : > { %v875_v11 = vpop.f32.mrf.mxu1 }
 0x1f2   : > { %v558_v18 = vadd.f32 %v875_v11, %v429_v12 }
 0x1f3   : > { %v552_v13 = vpop.f32.mrf.mxu1 }
 0x1f4   : > { %v553_v21 = vadd.f32 %v552_v13, %v424_v14 }
 0x1f5   : > { %v878_v15 = vpop.f32.mrf.mxu1 }
 0x1f6   : > { %v568_v16 = vadd.f32 %v878_v15, %v439_v7 }
 0x1f7   : > { %v562_v17 = vpop.f32.mrf.mxu1 }
 0x1f8   : > { %968 = vtanh.f32 %v568_v16  ;;  %v563_v19 = vadd.f32 %v562_v17, %v434_v9 }
 0x1fa   : > { %970 = vtanh.f32 %v563_v19 }
 0x1fb   : > { %972 = vtanh.f32 %v558_v18 }
 0x1fc   : > { %974 = vtanh.f32 %v553_v21 }
 0x1fd   : > { %976 = vtanh.f32 %v548_v23 }
 0x1fe   : > { %978 = vtanh.f32 %v543_v24 }
 0x1ff   : > { %980 = vtanh.f32 %v538_v26 }
 0x200   : > { %982 = vtanh.f32 %v533_v28 }
 0x205   : > { %v969_v29 = vpop.eup %968 }
 0x206   : > { %880 = vmatpush3.msra.mxu0 %v969_v29 }
 0x207   : > { %v971_v30 = vpop.eup %970  ;;  %881 = vmatprep.subr.mxu0 %v1085_v4 }
 0x208   : > { %882 = vmatpush3.msra.mxu0 %v971_v30  ;;  %v973_v31 = vpop.eup %972 }
 0x209   : > { %883 = vmatprep.subr.mxu0 %v1085_v4  ;;  %v975_v32 = vpop.eup %974 }
 0x20a   : > { %884 = vmatpush3.msra.mxu0 %v973_v31  ;;  %v977_v33 = vpop.eup %976 }
 0x20b   : > { %885 = vmatprep.subr.mxu0 %v1085_v4  ;;  %v979_v34 = vpop.eup %978 }
 0x20c   : > { %886 = vmatpush3.msra.mxu0 %v975_v32  ;;  %v981_v35 = vpop.eup %980 }
 0x20d   : > { %887 = vmatprep.subr.mxu0 %v1085_v4  ;;  %v983_v37 = vpop.eup %982 }
 0x20e   : > { %888 = vmatpush3.msra.mxu0 %v977_v33 }
 0x20f   : > { %889 = vmatprep.subr.mxu0 %v1085_v4 }
 0x210   : > { %890 = vmatpush3.msra.mxu0 %v979_v34 }
 0x211   : > { %891 = vmatprep.subr.mxu0 %v1085_v4 }
 0x212   : > { %892 = vmatpush3.msra.mxu0 %v981_v35 }
 0x213   : > { %893 = vmatprep.subr.mxu0 %v1085_v4 }
 0x214   : > { %894 = vmatpush3.msra.mxu0 %v983_v37 }
 0x215   : > { %896 = vmatmul.mubr.msk.f32.vlgmr.msra.gmra.mxu0 %vm441_vm1, %v794_v36 }
 0x2d5   : > { %v657_v39 = vpop.f32.mrf.mxu0 }
 0x2d6   : > { %v658_v40 = vadd.f32 %v657_v39, %v586_v38 }
 0x2d7   : > { %v897_v41 = vpop.f32.mrf.mxu0 }
 0x2d8   : > { %v661_v42 = vmul.f32 %v658_v40, %v658_v40 }
 0x2da   : > { %v662_v43 = vrot.slane %v661_v42, 4 }
 0x2dc   : > { %v663_v44 = vadd.f32 %v662_v43, %v661_v42 }
 0x2de   : > { %v664_v45 = vrot.slane %v663_v44, 2 }
 0x2e0   : > { %v665_v46 = vadd.f32 %v664_v45, %v663_v44 }
 0x2e2   : > { %v666_v47 = vrot.slane %v665_v46, 1 }
 0x2e4   : > { %v667_v48 = vadd.f32 %v666_v47, %v665_v46 }
 0x2e6   : > { %984 = vrsqrt.f32 %v667_v48  ;;  %vm670_vm3 = vcmp.eq.f32.partialorder %v667_v48, inf  ;;  %v673_v51 = vand.u32 2147483648, %v667_v48  ;;  %vm672_vm4 = vcmp.eq.f32.partialorder %v667_v48, 0.0 }
 0x2f3   : > { %v985_v49 = vpop.eup %984 }
 0x2f4   : > { %v669_v50 = vmul.f32 %v985_v49, %v667_v48 }
 0x2f6   : > { %v671_v52 = vsel %vm670_vm3, %v667_v48, %v669_v50 }
 0x2f7   : > { %v674_v53 = vsel %vm672_vm4, %v673_v51, %v671_v52 }
 0x2f8   : > { %675 = vst [vmem:[%s186_s6] sm:$0x1] %v674_v53 }
 0x2f9   : > { %1027 = shalt.err (!%p1024_p9)
}
 0x2fa   : > { %s1028_s28 = scalar_lea.hbm %s1338_s19, 16  ;;  %s1032_s30 = scalar_lea.hbm %s1377_s3, 48 }
 0x2fb   : > { %p1029_p0 = scmp.ne.s32.totalorder %s1338_s19, %s1028_s28  ;;  %p1033_p1 = scmp.lt.s32.totalorder %s1338_s19, %s1377_s3 }
 0x2fc   : > { %p1034_p3 = scmp.lt.s32.totalorder %s1032_s30, %s1028_s28 }
 0x2fd   : > { %p1030_p2 = pnand %p1029_p0, %p1387_p11 }
 0x2fe   : > { %p1035_p6 = por %p1034_p3, %p1033_p1 }
 0x2ff   : > { %p1031_p13 = pneg %p1030_p2 }
 0x301   : > { %p1036_p10 = pnand %p1035_p6, %p1031_p13 }
 0x303   : > { %1039 = shalt.err (!%p1036_p10)
}
 0x304   : > { %900 = dma.vmem_to_hbm [thread:$0]  (%p1387_p11), %s690_s7, 16, %s1338_s19, %s677_s20  }
 0x305 PF: > { %p911_p12 = scmp.ge.s32.totalorder %s1078_s15, 2  ;;  %s701_s11 = sand.u32 1, %s1066_s12  }
 0x306   : > { %p1388_p4 = scmp.ne.s32.totalorder %s1383_s25, 0  ;;  %s702_s17 = scalar_lea.sflag [#allocation4], %s701_s11 }
 0x308   : > { %p907_p5 = pnand %p911_p12, %p1388_p4 }
 0x30a   : > { %p908_p7 = pneg %p907_p5 }
 0x30c   : > { %1061 = dma.done.wait (%p908_p7), %s702_s17, 16  }
 0x30d   : > { %1063 = vsyncadd (%p908_p7), %s702_s17, 4294967280  ;;  %p16_p8 = scmp.ge.s32.totalorder %s1133_s18, 5   ;;  %s1389_s12 = smov %s1070_s13 }
 0x30e   : > { %s1390_s13 = smov %s1074_s14  ;;  %s1391_s14 = smov %s1145_s21 }
 0x30f   : > { %s1392_s15 = smov %s1133_s18  ;;  %18 = sbr.rel (!%p16_p8) target bundleno = 5 (0x5), region = 81 }
 0x314   :  { %706 = vsyncpa [#allocation3], 1 }
 0x315   :  { %708 = vsyncpa [#allocation3 + $0x1], 1 }
 0x316   :  { %709 = vsyncpa [#allocation4], 1 }
 0x317   :  { %711 = vsyncpa [#allocation4 + $0x1], 1 }

</bundles_post_ra>
